<compile_context>
chip_gen: v5e
topology: v5e:2x2
jax: 0.10.0
libtpu: 0.0.40
codegen_flags: <defaults>
</compile_context>

<pallas_src>
import functools

import jax
import jax.numpy as jnp
from jax.experimental import pallas as pl
from jax.experimental.pallas import tpu as pltpu


def _round_down(x, m):
    return x // m * m


def _cdiv(a, b):
    return (a + b - 1) // b


def _vmem_capacity_bytes():
    """Physical VMEM per TensorCore (v5e/v6e: 128 MiB, v7x: 64 MiB); safe fallback."""
    try:
        cap = int(pltpu.get_tpu_info().vmem_capacity_bytes)
        if cap > 0:
            return cap
    except Exception:
        pass
    return 64 * 1024 * 1024


def _dep_moments_kernel(z_ref, s_ref, *out_refs, n_rows, tile_n, num_classes, one_hot):
    """Accumulate second-moment statistics for one (tile_n, D) block of z.

    Grid is (parts, tiles_per_part); axis 0 is "parallel" (per-part partial moments
    in distinct output slabs), axis 1 is the "arbitrary" reduction over row tiles.
    The outputs double as resident accumulators (same block across axis 1).
    """
    if one_hot:
        gz_ref, gzs_ref, cs_ref = out_refs
    else:
        gz_ref, gzs_ref, cs_ref, cz_ref, gsd_ref, cnt_ref = out_refs

    p = pl.program_id(0)
    t = pl.program_id(1)

    @pl.when(t == 0)
    def _init():
        for ref in out_refs:
            ref[...] = jnp.zeros_like(ref)

    # Global row ids of this (logical, unclamped) tile.  Rows past n_rows (ragged
    # last tile / overshoot tiles of the part split) and rows with y != 1 are masked
    # here, so the wrapper never pads z in HBM.
    block_idx = p * pl.num_programs(1) + t
    rows = jax.lax.broadcasted_iota(jnp.int32, (tile_n, 1), 0) + block_idx * tile_n
    in_range = rows < n_rows

    z_raw = z_ref[...]                                    # (tile_n, D), f32 or bf16
    if one_hot:
        s_enc = s_ref[...]                                # (tile_n, 1) int32; -1 marks y != 1
        s_eff = jnp.where(in_range, s_enc, -1)
        row_sel = s_eff >= 0                              # (tile_n, 1) bool
        cols = jax.lax.broadcasted_iota(jnp.int32, (tile_n, num_classes), 1)
        onehot = cols == s_eff                            # (tile_n, C) exact one-hot
        zt = jnp.where(row_sel, z_raw, 0)                 # stays bf16 on the bf16 fast path
        st = onehot.astype(zt.dtype)
    else:
        sv = s_ref[...]                                   # (tile_n, 2) f32: [s_value, y]
        row_sel = in_range & (sv[:, 1:2] == 1.0)
        zt = jnp.where(row_sel, z_raw, 0).astype(jnp.float32)
        st = jnp.where(row_sel, sv[:, 0:1], 0.0)          # (tile_n, 1) f32

    # Contract over the row axis directly (no per-tile transpose/relayout of the MXU
    # operands; this lowering ran clean on TPU).  f32 accumulation on the MXU.
    dims = (((0,), (0,)), ((), ()))
    gz_ref[...] += jax.lax.dot_general(zt, zt, dims, preferred_element_type=jnp.float32)
    gzs_ref[...] += jax.lax.dot_general(zt, st, dims, preferred_element_type=jnp.float32)

    if one_hot:
        # Per-class counts (exact in f32).  Gs = diag(cs), m = sum(cs) and
        # c_z = Gzs @ 1 are reconstructed at finalize -> no Gs matmul, no cnt
        # accumulator, no 1-lane c_z matvec in the hot loop.
        cs_ref[...] += jnp.sum(onehot.astype(jnp.float32), axis=0, keepdims=True)
    else:
        cs_ref[...] += jnp.sum(st, axis=0, keepdims=True)                     # (1, 1)
        cz_ref[...] += jnp.sum(zt, axis=0, keepdims=True)                     # (1, D) lane-dense
        gsd_ref[...] += jnp.sum(st * st, axis=0, keepdims=True)               # (1, 1) = Gs
        cnt_ref[...] += jnp.sum(row_sel.astype(jnp.float32), axis=0, keepdims=True)


def eo_dep_loss_linear(z, s, y, *, num_classes, one_hot_s=True, norm=None,
                       block_rows=None, num_parts=2):
    """Pallas TPU implementation of EODEPLossLinear.forward (linear kernels).

    z: (N, D) representation, float32 or bfloat16 (bf16 streams at half the HBM cost).
    s: (N,) sensitive attribute: integer classes (one_hot_s=True) or real values.
    y: (N,) target attribute; rows with y == 1 are selected.
    block_rows: override for the N-tile size; by default it is derived from the
                local TPU's VMEM capacity (generation aware).
    num_parts: leading "parallel" grid axis (2 lets v7x use both TensorCores;
               negligible overhead on single-core v5e/v6e).
    """
    n, d = z.shape
    if z.dtype not in (jnp.float32, jnp.bfloat16):
        z = z.astype(jnp.float32)        # cast only when unavoidable: no extra HBM pass for f32/bf16
    z_bytes = jnp.dtype(z.dtype).itemsize

    if one_hot_s:
        c = int(num_classes)
        # Fold the y == 1 selection into the tiny side stream: -1 rows are dropped
        # in-kernel; the (N, C) one-hot matrix is never materialized in HBM.
        s_side = jnp.where(jnp.reshape(y, (n, 1)) == 1,
                           jnp.reshape(s, (n, 1)).astype(jnp.int32), -1)
        side_bytes = 4
    else:
        c = 1
        s_side = jnp.concatenate(
            [jnp.reshape(s, (n, 1)).astype(jnp.float32),
             jnp.reshape(y, (n, 1)).astype(jnp.float32)], axis=1)
        side_bytes = 8

    # ---- tile-size / VMEM budget (generation aware: v7x 64 MiB, v5e/v6e 128 MiB) ----
    vmem_cap = _vmem_capacity_bytes()
    row_mult = 16 if z.dtype == jnp.bfloat16 else 8
    if block_rows is not None:
        tile_n = max(row_mult, _round_down(int(block_rows), row_mult))
    else:
        fixed = 8 * (d * d + d * c + d + 4 * c) + (1 << 20)          # resident outputs + slack
        per_row = 3 * d * z_bytes + c * (z_bytes + 4) + 2 * side_bytes + 16
        tile_n = (int(vmem_cap * 0.7) - fixed) // max(per_row, 1)
        tile_n = max(row_mult, min(_round_down(tile_n, row_mult), 4096))
    tile_n = min(tile_n, max(row_mult, _round_down(n, row_mult)))

    num_blocks = _cdiv(n, tile_n)
    parts = max(1, min(int(num_parts), num_blocks))
    tiles_per_part = _cdiv(num_blocks, parts)
    last_block = num_blocks - 1

    def stream_map(p, t):
        # Clamp so overshoot tiles (parts * tiles_per_part > num_blocks) keep the DMA
        # in bounds; their rows are masked out in-kernel via the row-id check.
        return (jnp.minimum(p * tiles_per_part + t, last_block), 0)

    part_map = lambda p, t: (p, 0, 0)

    in_specs = [
        pl.BlockSpec((tile_n, d), stream_map),                 # z: the only large HBM stream
        pl.BlockSpec((tile_n, s_side.shape[1]), stream_map),   # tiny s/y side stream
    ]
    out_shape = [
        jax.ShapeDtypeStruct((parts, d, d), jnp.float32),      # Gz  = Zm^T Zm
        jax.ShapeDtypeStruct((parts, d, c), jnp.float32),      # Gzs = Zm^T Sm
        jax.ShapeDtypeStruct((parts, 1, c), jnp.float32),      # cs  = Sm^T 1
    ]
    out_specs = [
        pl.BlockSpec((None, d, d), part_map),
        pl.BlockSpec((None, d, c), part_map),
        pl.BlockSpec((None, 1, c), part_map),
    ]
    if not one_hot_s:
        out_shape += [
            jax.ShapeDtypeStruct((parts, 1, d), jnp.float32),  # cz = Zm^T 1
            jax.ShapeDtypeStruct((parts, 1, 1), jnp.float32),  # Gs = sum s^2
            jax.ShapeDtypeStruct((parts, 1, 1), jnp.float32),  # m  = sum(mask)
        ]
        out_specs += [
            pl.BlockSpec((None, 1, d), part_map),
            pl.BlockSpec((None, 1, 1), part_map),
            pl.BlockSpec((None, 1, 1), part_map),
        ]

    # vmem_limit derived from the actual tile footprint (double-buffered streams +
    # in-kernel temporaries + resident accumulators).  Default pipeline depth (2) is
    # kept; raise via pl.Buffered only if a profile shows exposed DMA.
    vmem_need = (2 * tile_n * (d * z_bytes + side_bytes)
                 + tile_n * (d * z_bytes + 8 * c)
                 + 8 * (d * d + d * c + d + 4 * c + 4)
                 + (2 << 20))
    vmem_limit = int(min(vmem_cap * 0.9, max(vmem_need, 32 * 1024 * 1024)))

    kernel = functools.partial(
        _dep_moments_kernel, n_rows=n, tile_n=tile_n, num_classes=c, one_hot=one_hot_s)

    moments = pl.pallas_call(
        kernel,
        out_shape=tuple(out_shape),
        grid_spec=pltpu.PrefetchScalarGridSpec(
            num_scalar_prefetch=0,
            grid=(parts, tiles_per_part),
            in_specs=in_specs,
            out_specs=out_specs,
        ),
        compiler_params=pltpu.CompilerParams(
            dimension_semantics=("parallel", "arbitrary"),
            vmem_limit_bytes=vmem_limit,
        ),
    )(z, s_side)

    # ---- tiny D x C finalize in plain JAX (sum the per-part partial moments) ----
    if one_hot_s:
        gz_p, gzs_p, cs_p = moments
        gz, gzs, cs = gz_p.sum(0), gzs_p.sum(0), cs_p.sum(0)
        count = jnp.sum(cs)                                   # m = number of y == 1 rows
        cz_col = jnp.sum(gzs, axis=1, keepdims=True)          # Zm^T 1 = Gzs @ 1 (exact one-hot)
        gs_diag = cs                                          # Gs = diag(class counts)
    else:
        gz_p, gzs_p, cs_p, cz_p, gsd_p, cnt_p = moments
        gz, gzs, cs = gz_p.sum(0), gzs_p.sum(0), cs_p.sum(0)
        cz_col = cz_p.sum(0).T                                # (D, 1)
        gs_diag = gsd_p.sum(0)                                # (1, 1)
        count = jnp.sum(cnt_p)

    m_safe = jnp.maximum(count, 1.0)                          # reference pdb's on m == 0
    a = gzs - (cz_col * cs) / m_safe                          # A = Zm^T (I - 11^T/m) Sm
    gza = gz @ a                                              # Gz A
    ags = a * gs_diag                                         # A Gs (Gs diagonal)
    dep = jnp.sqrt(jnp.sum(gza * ags))                        # ||K_zm^T K_sm||_F
    if norm is not None:
        dep = dep / (norm * count)
    return dep


def _reference(z, s, y, num_classes, one_hot_s=True):
    """Pure-JAX reference mirroring the PyTorch forward (f32 instead of f64)."""
    mask = y == 1
    zm = z[mask].astype(jnp.float32)
    if one_hot_s:
        sm = jax.nn.one_hot(s[mask].astype(jnp.int32), num_classes, dtype=jnp.float32)
    else:
        sm = s[mask].reshape(-1, 1).astype(jnp.float32)
    k_s = sm @ sm.T
    k_sm = k_s - k_s.mean(axis=0, keepdims=True)
    k_z = zm @ zm.T
    k_zm = k_z - k_z.mean(axis=0, keepdims=True)
    return jnp.linalg.norm(k_zm.T @ k_sm)


if __name__ == "__main__":
    key = jax.random.PRNGKey(0)
    kz, ks, ky, ksv = jax.random.split(key, 4)

    N, D, C = 40, 32, 4          # batch=40, hidden=32, onehot_num_classes=4
    z = jax.random.normal(kz, (N, D), dtype=jnp.float32)
    s = jax.random.randint(ks, (N,), 0, C)
    y = jax.random.bernoulli(ky, 0.5, (N,)).astype(jnp.float32)
    y = y.at[0].set(1.0)         # ensure sum(mask) > 0

    # One-hot S path with a small tile: exercises ragged last tile, the 2-part
    # "parallel" split (incl. one clamped overshoot tile) and init/accumulate paths.
    dep = eo_dep_loss_linear(z, s, y, num_classes=C, one_hot_s=True, block_rows=16)
    dep = jax.block_until_ready(dep)
    ref = _reference(z, s, y, C, one_hot_s=True)
    assert jnp.allclose(dep, ref, rtol=5e-3, atol=1e-3), (dep, ref)

    # Default auto (VMEM-budget-derived) tile size must agree too.
    dep_auto = jax.block_until_ready(
        eo_dep_loss_linear(z, s, y, num_classes=C, one_hot_s=True))
    assert jnp.allclose(dep_auto, ref, rtol=5e-3, atol=1e-3), (dep_auto, ref)

    # bf16 z fast path (half the dominant HBM stream, f32 MXU accumulation); compare
    # against a reference on the same bf16-quantized inputs.
    z_bf = z.astype(jnp.bfloat16)
    dep_bf = jax.block_until_ready(
        eo_dep_loss_linear(z_bf, s, y, num_classes=C, one_hot_s=True, block_rows=16))
    ref_bf = _reference(z_bf.astype(jnp.float32), s, y, C, one_hot_s=True)
    assert jnp.allclose(dep_bf, ref_bf, rtol=2e-2, atol=1e-2), (dep_bf, ref_bf)

    # one_hot_s=False branch (S used as a single real-valued column).
    s_val = jax.random.normal(ksv, (N,), dtype=jnp.float32)
    dep_dense = jax.block_until_ready(
        eo_dep_loss_linear(z, s_val, y, num_classes=C, one_hot_s=False, block_rows=16))
    ref_dense = _reference(z, s_val, y, C, one_hot_s=False)
    assert jnp.allclose(dep_dense, ref_dense, rtol=5e-3, atol=1e-3), (dep_dense, ref_dense)

    print("KERNEL_OK")
</pallas_src>

<mosaic_0001>
module attributes {stable_mosaic.version = 11 : i64} {
  func.func @_dep_moments_kernel(%arg0: i32, %arg1: i32, %arg2: memref<16x32xf32, #tpu.memory_space<vmem>>, %arg3: memref<16x1xi32, #tpu.memory_space<vmem>>, %arg4: memref<1x32x32xf32, #tpu.memory_space<vmem>>, %arg5: memref<1x32x4xf32, #tpu.memory_space<vmem>>, %arg6: memref<1x1x4xf32, #tpu.memory_space<vmem>>) attributes {dimension_semantics = [#tpu.dimension_semantics<parallel>, #tpu.dimension_semantics<arbitrary>], iteration_bounds = array<i64: 2, 2>, scalar_prefetch = 0 : i64, scratch_operands = 0 : i64, tpu.core_type = #tpu.core_type<tc>, window_params = [{transform_indices = @transform_0, window_bounds = array<i64: 16, 32>}, {transform_indices = @transform_1, window_bounds = array<i64: 16, 1>}, {transform_indices = @transform_2, window_bounds = array<i64: 1, 32, 32>}, {transform_indices = @transform_3, window_bounds = array<i64: 1, 32, 4>}, {transform_indices = @transform_4, window_bounds = array<i64: 1, 1, 4>}]} {
    %c0_i32 = arith.constant 0 : i32
    %0 = arith.cmpi eq, %arg1, %c0_i32 : i32
    %1 = arith.extui %0 : i1 to i32
    %c0_i32_0 = arith.constant 0 : i32
    %2 = arith.cmpi ne, %1, %c0_i32_0 : i32
    scf.if %2 {
      %cst_26 = arith.constant 0.000000e+00 : f32
      %51 = vector.broadcast %cst_26 : f32 to vector<32x32xf32>
      %c0_27 = arith.constant 0 : index
      %c0_28 = arith.constant 0 : index
      %c0_29 = arith.constant 0 : index
      %52 = vector.load %arg4[%c0_27, %c0_28, %c0_29] : memref<1x32x32xf32, #tpu.memory_space<vmem>>, vector<1x32x32xf32>
      %53 = vector.shape_cast %52 : vector<1x32x32xf32> to vector<32x32xf32>
      %54 = vector.shape_cast %51 : vector<32x32xf32> to vector<1x32x32xf32>
      tpu.vector_store %arg4[%c0_27, %c0_28, %c0_29], %54 {strides = array<i32>} : memref<1x32x32xf32, #tpu.memory_space<vmem>>, vector<1x32x32xf32>,
      %cst_30 = arith.constant 0.000000e+00 : f32
      %55 = vector.broadcast %cst_30 : f32 to vector<32x4xf32>
      %c0_31 = arith.constant 0 : index
      %c0_32 = arith.constant 0 : index
      %c0_33 = arith.constant 0 : index
      %56 = vector.load %arg5[%c0_31, %c0_32, %c0_33] : memref<1x32x4xf32, #tpu.memory_space<vmem>>, vector<1x32x4xf32>
      %57 = vector.shape_cast %56 : vector<1x32x4xf32> to vector<32x4xf32>
      %58 = vector.shape_cast %55 : vector<32x4xf32> to vector<1x32x4xf32>
      tpu.vector_store %arg5[%c0_31, %c0_32, %c0_33], %58 {strides = array<i32>} : memref<1x32x4xf32, #tpu.memory_space<vmem>>, vector<1x32x4xf32>,
      %cst_34 = arith.constant 0.000000e+00 : f32
      %59 = vector.broadcast %cst_34 : f32 to vector<1x4xf32>
      %c0_35 = arith.constant 0 : index
      %c0_36 = arith.constant 0 : index
      %c0_37 = arith.constant 0 : index
      %60 = vector.load %arg6[%c0_35, %c0_36, %c0_37] : memref<1x1x4xf32, #tpu.memory_space<vmem>>, vector<1x1x4xf32>
      %61 = vector.shape_cast %60 : vector<1x1x4xf32> to vector<1x4xf32>
      %62 = vector.shape_cast %59 : vector<1x4xf32> to vector<1x1x4xf32>
      tpu.vector_store %arg6[%c0_35, %c0_36, %c0_37], %62 {strides = array<i32>} : memref<1x1x4xf32, #tpu.memory_space<vmem>>, vector<1x1x4xf32>,
    } else {
    }
    %c2_i32 = arith.constant 2 : i32
    %3 = arith.muli %arg0, %c2_i32 : i32
    %4 = arith.addi %3, %arg1 : i32
    %5 = tpu.iota {dimensions = array<i32: 0>} : vector<16x1xi32>
    %c16_i32 = arith.constant 16 : i32
    %6 = arith.muli %4, %c16_i32 : i32
    %7 = vector.broadcast %6 : i32 to vector<16x1xi32>
    %8 = arith.addi %5, %7 : vector<16x1xi32>
    %c40_i32 = arith.constant 40 : i32
    %9 = vector.broadcast %c40_i32 : i32 to vector<16x1xi32>
    %10 = arith.cmpi slt, %8, %9 : vector<16x1xi32>
    %c0 = arith.constant 0 : index
    %c0_1 = arith.constant 0 : index
    %11 = vector.load %arg2[%c0, %c0_1] : memref<16x32xf32, #tpu.memory_space<vmem>>, vector<16x32xf32>
    %c0_2 = arith.constant 0 : index
    %c0_3 = arith.constant 0 : index
    %12 = vector.load %arg3[%c0_2, %c0_3] : memref<16x1xi32, #tpu.memory_space<vmem>>, vector<16x1xi32>
    %c-1_i32 = arith.constant -1 : i32
    %13 = vector.broadcast %c-1_i32 : i32 to vector<16x1xi32>
    %14 = arith.select %10, %12, %13 : vector<16x1xi1>, vector<16x1xi32>
    %c0_i32_4 = arith.constant 0 : i32
    %15 = vector.broadcast %c0_i32_4 : i32 to vector<16x1xi32>
    %16 = arith.cmpi sge, %14, %15 : vector<16x1xi32>
    %17 = tpu.iota {dimensions = array<i32: 1>} : vector<16x4xi32>
    %18 = vector.broadcast %14 : vector<16x1xi32> to vector<16x4xi32>
    %19 = arith.cmpi eq, %17, %18 : vector<16x4xi32>
    %c0_i32_5 = arith.constant 0 : i32
    %20 = arith.sitofp %c0_i32_5 : i32 to f32
    %21 = vector.shape_cast %16 : vector<16x1xi1> to vector<16x1xi1>
    %22 = vector.broadcast %21 : vector<16x1xi1> to vector<16x32xi1>
    %23 = vector.broadcast %20 : f32 to vector<16x32xf32>
    %24 = arith.select %22, %11, %23 : vector<16x32xi1>, vector<16x32xf32>
    %25 = arith.extui %19 : vector<16x4xi1> to vector<16x4xi32>
    %26 = arith.sitofp %25 : vector<16x4xi32> to vector<16x4xf32>
    %c0_6 = arith.constant 0 : index
    %c0_7 = arith.constant 0 : index
    %c0_8 = arith.constant 0 : index
    %27 = vector.load %arg4[%c0_6, %c0_7, %c0_8] : memref<1x32x32xf32, #tpu.memory_space<vmem>>, vector<1x32x32xf32>
    %28 = vector.shape_cast %27 : vector<1x32x32xf32> to vector<32x32xf32>
    %cst = arith.constant dense<0.000000e+00> : vector<32x32xf32>
    %29 = tpu.matmul %24, %24, %cst {dimension_numbers = #tpu.dot_dimension_numbers<[0], [0], [1], [1], [0, 1, 1, 1], [], []>} : vector<16x32xf32>, vector<16x32xf32>, vector<32x32xf32> -> vector<32x32xf32>
    %30 = arith.addf %28, %29 : vector<32x32xf32>
    %c0_9 = arith.constant 0 : index
    %c0_10 = arith.constant 0 : index
    %c0_11 = arith.constant 0 : index
    %31 = vector.load %arg4[%c0_9, %c0_10, %c0_11] : memref<1x32x32xf32, #tpu.memory_space<vmem>>, vector<1x32x32xf32>
    %32 = vector.shape_cast %31 : vector<1x32x32xf32> to vector<32x32xf32>
    %33 = vector.shape_cast %30 : vector<32x32xf32> to vector<1x32x32xf32>
    tpu.vector_store %arg4[%c0_9, %c0_10, %c0_11], %33 {strides = array<i32>} : memref<1x32x32xf32, #tpu.memory_space<vmem>>, vector<1x32x32xf32>,
    %c0_12 = arith.constant 0 : index
    %c0_13 = arith.constant 0 : index
    %c0_14 = arith.constant 0 : index
    %34 = vector.load %arg5[%c0_12, %c0_13, %c0_14] : memref<1x32x4xf32, #tpu.memory_space<vmem>>, vector<1x32x4xf32>
    %35 = vector.shape_cast %34 : vector<1x32x4xf32> to vector<32x4xf32>
    %cst_15 = arith.constant dense<0.000000e+00> : vector<32x4xf32>
    %36 = tpu.matmul %24, %26, %cst_15 {dimension_numbers = #tpu.dot_dimension_numbers<[0], [0], [1], [1], [0, 1, 1, 1], [], []>} : vector<16x32xf32>, vector<16x4xf32>, vector<32x4xf32> -> vector<32x4xf32>
    %37 = arith.addf %35, %36 : vector<32x4xf32>
    %c0_16 = arith.constant 0 : index
    %c0_17 = arith.constant 0 : index
    %c0_18 = arith.constant 0 : index
    %38 = vector.load %arg5[%c0_16, %c0_17, %c0_18] : memref<1x32x4xf32, #tpu.memory_space<vmem>>, vector<1x32x4xf32>
    %39 = vector.shape_cast %38 : vector<1x32x4xf32> to vector<32x4xf32>
    %40 = vector.shape_cast %37 : vector<32x4xf32> to vector<1x32x4xf32>
    tpu.vector_store %arg5[%c0_16, %c0_17, %c0_18], %40 {strides = array<i32>} : memref<1x32x4xf32, #tpu.memory_space<vmem>>, vector<1x32x4xf32>,
    %c0_19 = arith.constant 0 : index
    %c0_20 = arith.constant 0 : index
    %c0_21 = arith.constant 0 : index
    %41 = vector.load %arg6[%c0_19, %c0_20, %c0_21] : memref<1x1x4xf32, #tpu.memory_space<vmem>>, vector<1x1x4xf32>
    %42 = vector.shape_cast %41 : vector<1x1x4xf32> to vector<1x4xf32>
    %43 = arith.extui %19 : vector<16x4xi1> to vector<16x4xi32>
    %44 = arith.sitofp %43 : vector<16x4xi32> to vector<16x4xf32>
    %cst_22 = arith.constant dense<0.000000e+00> : vector<4xf32>
    %45 = vector.multi_reduction <add>, %44, %cst_22 [0] : vector<16x4xf32> to vector<4xf32>
    %46 = vector.shape_cast %45 : vector<4xf32> to vector<1x4xf32>
    %47 = arith.addf %42, %46 : vector<1x4xf32>
    %c0_23 = arith.constant 0 : index
    %c0_24 = arith.constant 0 : index
    %c0_25 = arith.constant 0 : index
    %48 = vector.load %arg6[%c0_23, %c0_24, %c0_25] : memref<1x1x4xf32, #tpu.memory_space<vmem>>, vector<1x1x4xf32>
    %49 = vector.shape_cast %48 : vector<1x1x4xf32> to vector<1x4xf32>
    %50 = vector.shape_cast %47 : vector<1x4xf32> to vector<1x1x4xf32>
    tpu.vector_store %arg6[%c0_23, %c0_24, %c0_25], %50 {strides = array<i32>} : memref<1x1x4xf32, #tpu.memory_space<vmem>>, vector<1x1x4xf32>,
    return
  }
  func.func @transform_0(%arg0: i32, %arg1: i32) -> (i32, i32) {
    %c2_i32 = arith.constant 2 : i32
    %0 = arith.muli %arg0, %c2_i32 : i32
    %1 = arith.addi %0, %arg1 : i32
    %c2_i32_0 = arith.constant 2 : i32
    %2 = arith.minsi %1, %c2_i32_0 : i32
    %c0_i32 = arith.constant 0 : i32
    %c0_i32_1 = arith.constant 0 : i32
    return %2, %c0_i32 : i32, i32
  }
  func.func @transform_1(%arg0: i32, %arg1: i32) -> (i32, i32) {
    %c2_i32 = arith.constant 2 : i32
    %0 = arith.muli %arg0, %c2_i32 : i32
    %1 = arith.addi %0, %arg1 : i32
    %c2_i32_0 = arith.constant 2 : i32
    %2 = arith.minsi %1, %c2_i32_0 : i32
    %c0_i32 = arith.constant 0 : i32
    %c0_i32_1 = arith.constant 0 : i32
    return %2, %c0_i32 : i32, i32
  }
  func.func @transform_2(%arg0: i32, %arg1: i32) -> (i32, i32, i32) {
    %c0_i32 = arith.constant 0 : i32
    %c0_i32_0 = arith.constant 0 : i32
    %c0_i32_1 = arith.constant 0 : i32
    return %arg0, %c0_i32, %c0_i32_0 : i32, i32, i32
  }
  func.func @transform_3(%arg0: i32, %arg1: i32) -> (i32, i32, i32) {
    %c0_i32 = arith.constant 0 : i32
    %c0_i32_0 = arith.constant 0 : i32
    %c0_i32_1 = arith.constant 0 : i32
    return %arg0, %c0_i32, %c0_i32_0 : i32, i32, i32
  }
  func.func @transform_4(%arg0: i32, %arg1: i32) -> (i32, i32, i32) {
    %c0_i32 = arith.constant 0 : i32
    %c0_i32_0 = arith.constant 0 : i32
    %c0_i32_1 = arith.constant 0 : i32
    return %arg0, %c0_i32, %c0_i32_0 : i32, i32, i32
  }
}

</mosaic_0001>

<bundles_post_ra>
// kernel: tpu_custom_call.1
= control target key start
LH: loop header
LB: loop body
LE: loop exit
PB: predicated region body
PF: predicated region fallthrough
CT: control target
= control target key end

     0   :  { %10 = vsyncpa [#allocation3], 0  ;;  %s1228_s0 = inlined_call_operand.vmem [shape: f32[40,32], index: 0, kind: input, shape index: {}]   ;;  %s1229_s1 = inlined_call_operand.vmem [shape: s32[40,1], index: 1, kind: input, shape index: {}]   ;;  %s1230_s2 = inlined_call_operand.hbm [shape: f32[2,32,32], index: 2, kind: output, shape index: {0}]   ;;  %s1231_s3 = inlined_call_operand.vmem [shape: f32[2,32,4], index: 3, kind: output, shape index: {1}]   ;;  %s1232_s4 = inlined_call_operand.hbm [shape: f32[2,1,4], index: 4, kind: output, shape index: {2}]  }
   0x1   :  { %12 = vsyncpa [#allocation3 + $0x1], 0 }
   0x2   :  { %13 = vsyncpa [#allocation5], 0 }
   0x3   :  { %15 = vsyncpa [#allocation5 + $0x1], 0  ;;  %s1021_s15 = smov 0   ;;  %s1023_s16 = smov 0  }
   0x4   :  { %s1025_s17 = smov 0   ;;  %s1027_s18 = smov 0  }
   0x5   :  { %s1029_s19 = smov 0   ;;  %s1031_s20 = smov 0  }
   0x6   :  { %s1033_s21 = smov 0   ;;  %s1035_s22 = smov 0  }
   0x7 LB: > { %1236 = sst [smem:[#allocation8_spill]] %s980_s20  ;;  %s732_s23 = sadd.s32 4294967295, %s988_s22   ;;  %s988_s22 = sphi %s1035_s22, %s21_s22   ;;  %s984_s21 = sphi %s1033_s21, %s1245_s21   ;;  %s980_s20 = sphi %s1031_s20, %s1244_s20   ;;  %s976_s19 = sphi %s1029_s19, %s1243_s19   ;;  %s972_s18 = sphi %s1027_s18, %s1242_s18   ;;  %s968_s17 = sphi %s1025_s17, %s1248_s17   ;;  %s964_s16 = sphi %s1023_s16, %s1247_s16   ;;  %s960_s15 = sphi %s1021_s15, %s1246_s15  }
   0x8   : > { %1237 = sst [smem:[#allocation9_spill]] %s984_s21  ;;  %s733_s24 = sadd.s32 4294967294, %s988_s22  }
   0x9   : > { %s30_s25 = sadd.s32 1, %s980_s20  ;;  %s33_s26 = sadd.s32 1, %s984_s21 }
   0xa   : > { %p31_p0 = scmp.ge.s32.totalorder %s30_s25, 2  ;;  %p118_p1 = scmp.ne.s32.totalorder %s968_s17, %s964_s16 }
   0xb   : > { %p119_p2 = scmp.eq.s32.totalorder %s732_s23, 3  ;;  %p124_p4 = scmp.ne.s32.totalorder %s964_s16, %s960_s15 }
   0xc   : > { %s1250_s25 = smov (%p31_p0, %s30_s25), 0  ;;  %s1252_s26 = smov (!%p31_p0, %s33_s26), %s984_s21 }
   0xd   : > { %1238 = sst [smem:[#allocation10_spill]] %s1250_s25  ;;  %p1070_p3 = por %p119_p2, %p118_p1 }
   0xe   : > { %p35_p5 = scmp.ge.s32.totalorder %s1252_s26, 2  ;;  %p125_p6 = scmp.eq.s32.totalorder %s733_s24, 3 }
   0xf   : > { %p740_p7 = scmp.ge.s32.totalorder %s988_s22, 1  ;;  %p245_p8 = scmp.lt.s32.totalorder %s988_s22, 5 }
  0x10   : > { %s1254_s26 = smov (%p35_p5, %s1252_s26), 0  ;;  %p1080_p9 = por %p125_p6, %p124_p4 }
  0x11   : > { %1240 = sst [smem:[#allocation11_spill]] %s1254_s26  ;;  %p246_p10 = pnand %p740_p7, %p245_p8 }
  0x12   : > { %s105_s29 = ssub.s32 %s984_s21, %s1254_s26  ;;  %s108_s30 = sadd.s32 1, %s968_s17 }
  0x13   : > { %p106_p11 = scmp.eq.s32.totalorder %s105_s29, 0  ;;  %249 = sbr.rel (%p246_p10) target bundleno = 489 (0x1e9), region = 28 }
  0x14   : > { %s1091_s6 = sand.u32 (!%p246_p10), 1, %s964_s16   ;;  %s742_s7 = sshll.u32 (!%p246_p10), %s976_s19, 1 }
  0x15   : > { %s1088_s5 = scalar_select %p106_p11, %s968_s17, %s108_s30  }
  0x16   : > { %s741_s8 = sshll.u32 (!%p246_p10), %s1091_s6, 5  ;;  %s1096_s9 = sadd.s32 (!%p246_p10), %s972_s18, %s742_s7 }
  0x17   : > { %p303_p12 = scmp.lt.s32.totalorder (!%p246_p10), %s1096_s9, 2  ;;  %p345_p13 = scmp.lt.s32.totalorder (!%p246_p10), %s976_s19, 1 }
  0x18   : > { %p750_p1 = scmp.ne.s32.totalorder %s972_s18, 0 }
  0x19   : > { %s304_s10 = scalar_select %p303_p12, %s1096_s9, 2 }
  0x1a   : > { %s346_s11 = scalar_select %p345_p13, %s976_s19, 1 }
  0x1b   : > { %s743_s12 = sshll.u32 %s304_s10, 1  ;;  %s1117_s10 = scalar_lea.vmem [#allocation2], %s741_s8 }
  0x1c   : > { %p310_p0 = scmp.lt.s32.totalorder %s743_s12, 4  ;;  %s772_s13 = sshll.u32 %s346_s11, 5 }
  0x1d   : > { %s1105_s24 = scalar_lea.vmem %s1231_s3, %s772_s13  ;;  %s1120_s11 = scalar_lea.vmem [#allocation4], %s1091_s6 }
  0x1e   : > { %s1256_s12 = smov (!%p310_p0, %s743_s12), 4  ;;  %353 = sbr.rel (%p750_p1) target bundleno = 45 (0x2d), region = 32 }
  0x1f   : > { %s744_s29 = sshll.u32 %s1256_s12, 3 }
  0x20   : > { %s1110_s7 = scalar_lea.vmem %s1228_s0, %s744_s29  ;;  %s1115_s20 = scalar_lea.vmem %s1229_s1, %s744_s29 }
  0x23   : > { %vm354_vm0 = vcmask 261120   ;;  %v990_v0 = vmov 0.0   ;;  %vm359_vm1 = vcmask 31744   ;;  %vm364_vm2 = vcmask 24576  }
  0x24   : > { %355 = vst.msk [vmem:[%s1117_s10] sm:$0xff] %vm354_vm0, %v990_v0 }
  0x25   : > { %356 = vst.msk [vmem:[%s1117_s10 + $0x8] sm:$0xff] %vm354_vm0, %v990_v0 }
  0x26   : > { %357 = vst.msk [vmem:[%s1117_s10 + $0x10] sm:$0xff] %vm354_vm0, %v990_v0 }
  0x27   : > { %358 = vst.msk [vmem:[%s1117_s10 + $0x18] sm:$0xff] %vm354_vm0, %v990_v0 }
  0x28   : > { %360 = vst.msk [vmem:[%s1105_s24] sm:$0xff] %vm359_vm1, %v990_v0 }
  0x29   : > { %361 = vst.msk [vmem:[%s1105_s24 + $0x8] sm:$0xff] %vm359_vm1, %v990_v0 }
  0x2a   : > { %362 = vst.msk [vmem:[%s1105_s24 + $0x10] sm:$0xff] %vm359_vm1, %v990_v0 }
  0x2b   : > { %363 = vst.msk [vmem:[%s1105_s24 + $0x18] sm:$0xff] %vm359_vm1, %v990_v0 }
  0x2c   : > { %365 = vst.msk [vmem:[%s1120_s11] sm:$0x1] %vm364_vm2, %v990_v0 }
  0x2d PF: > { %v368_v1 = vlaneseq  ;;  %s752_s18 = sshll.u32 %s1096_s9, 4  ;;  %v991_v2 = vmov 0   ;;  %v379_v6 = vld [vmem:[%s1115_s20] sm:$0xff]  ;;  %v380_v9 = vld [vmem:[%s1115_s20 + $0x8] sm:$0xff]  ;;  %v992_v19 = vmov 1.0   ;;  %vm535_vm9 = vcmask 31744   ;;  %s592_s25 = scalar_lea.hbm %s1232_s4, %s976_s19 }
  0x2e   : > { %860 = vset.pattern.permute.xlu0 %v991_v2  ;;  %v372_v3 = vstv %s752_s18  ;;  %861 = vset.pattern.permute.xlu1 %v991_v2  ;;  %v377_v15 = vld [vmem:[%s1110_s7] sm:$0xff]  ;;  %v993_v20 = vmov 0.0   ;;  %v378_v22 = vld [vmem:[%s1110_s7 + $0x8] sm:$0xff]  ;;  %vm551_vm12 = vcmask 24576   ;;  %vm447_vm13 = vcmask 130048   ;;  %s594_s26 = sshll.u32 %s1120_s11, 4  ;;  %s595_s26 = int_to_ptr.vmem [resolvable:$true] %s594_s26 }
  0x2f   : > { %v369_v4 = vshrl.u32 %v368_v1, 7  ;;  %v386_v14 = vand.u32 127, %v368_v1  ;;  %s596_s8 = sshll.u32 %s592_s25, 4  ;;  %s564_s9 = scalar_lea.sflag [#allocation5], %s1091_s6  ;;  %s597_s8 = int_to_ptr.hbm [resolvable:$true] %s596_s8 }
  0x30   : > { %s876_s12 = sshra.s32 %s597_s8, 4  ;;  %s882_s29 = scalar_lea.hbm %s1232_s4, 2  ;;  %s877_s12 = int_to_ptr.hbm [resolvable:$true] %s876_s12 }
  0x31   : > { %v373_v5 = vadd.s32 %v372_v3, %v369_v4  ;;  %v370_v7 = vadd.s32 8, %v369_v4  ;;  %s878_s13 = scalar_lea.hbm %s877_s12, 1  ;;  %p883_p6 = scmp.lt.s32.totalorder %s877_s12, %s1232_s4 }
  0x32   : > { %p879_p2 = scmp.ne.s32.totalorder %s877_s12, %s878_s13  ;;  %p884_p7 = scmp.lt.s32.totalorder %s882_s29, %s878_s13 }
  0x33   : > { %vm375_vm3 = vcmp.lt.s32.totalorder %v373_v5, 40  ;;  %v374_v8 = vadd.s32 %v372_v3, %v370_v7  ;;  %v540_v36 = vld [vmem:[%s1120_s11] sm:$0x1] }
  0x34   : > { %v381_v10 = vsel %vm375_vm3, %v379_v6, 4294967295  ;;  %p880_p4 = pnand %p879_p2, %p1070_p3  ;;  %p885_p8 = por %p884_p7, %p883_p6 }
  0x35   : > { %vm383_vm4 = vcmp.ge.s32.totalorder %v381_v10, 0  ;;  %vm376_vm5 = vcmp.lt.s32.totalorder %v374_v8, 40 }
  0x36   : > { %v395_v11 = vsel %vm383_vm4, 1, %v991_v2  ;;  %v382_v12 = vsel %vm376_vm5, %v380_v9, 4294967295  ;;  %p881_p5 = pneg %p880_p4 }
  0x37   : > { %398 = vperm.xlu0 %860, %v395_v11   ;;  %391 = vperm.xlu1 %861, %v382_v12   ;;  %vm384_vm6 = vcmp.ge.s32.totalorder %v382_v12, 0 }
  0x38   : > { %v396_v13 = vsel %vm384_vm6, 1, %v991_v2  ;;  %p886_p10 = pnand %p885_p8, %p881_p5 }
  0x3f   : > { %401 = vperm.xlu0 %860, %v396_v13   ;;  %388 = vperm.xlu1 %861, %v381_v10  }
  0xa9   : > { %v399_v16 = vpop.permute.xlu0 %398  ;;  %v392_v17 = vpop.permute.xlu1 %391 }
  0xaa   : > { %vm403_vm7 = vcmp.eq.s32.totalorder %v399_v16, 1  ;;  %vm394_vm8 = vcmp.eq.s32.totalorder %v386_v14, %v392_v17 }
  0xab   : > { %v405_v18 = vsel %vm403_vm7, %v377_v15, 0.0  ;;  %761 = vmatpush.msk.msra.mxu1 %vm394_vm8, %v992_v19  ;;  %776 = vmatpush.msk.msra.mxu3 %vm394_vm8, %v992_v19  ;;  %v754_v21 = vsel %vm394_vm8, 1.0, %v993_v20 }
  0xac   : > { %415 = vxpose.xlu2.b32.start [1/2] (short) (narrow) %v405_v18, 32  ;;  %v542_v25 = vsel %vm535_vm9, %v754_v21, 0.0 }
  0xb1   : > { %v402_v23 = vpop.permute.xlu0 %401  ;;  %v389_v24 = vpop.permute.xlu1 %388 }
  0xb2   : > { %vm404_vm10 = vcmp.eq.s32.totalorder %v402_v23, 1  ;;  %vm393_vm11 = vcmp.eq.s32.totalorder %v386_v14, %v389_v24 }
  0xb3   : > { %755 = vmatpush.msk.msra.mxu0 %vm404_vm10, %v378_v22  ;;  %774 = vmatpush.msk.msra.mxu2 %vm404_vm10, %v378_v22  ;;  %v406_v26 = vsel %vm404_vm10, %v378_v22, 0.0  ;;  %v753_v27 = vsel %vm393_vm11, 1.0, %v993_v20 }
  0xb4   : > { %416 = vxpose.xlu2.b32.end [2/2] (short) (narrow) %v406_v26, 32  ;;  %v541_v28 = vsel %vm535_vm9, %v753_v27, 0.0  ;;  %762 = vmatpush.msk.msra.mxu1 %vm393_vm11, %v992_v19 }
  0xb5   : > { %756 = vmatpush.msk.msra.mxu0 %vm403_vm7, %v377_v15  ;;  %775 = vmatpush.msk.msra.mxu2 %vm403_vm7, %v377_v15  ;;  %v543_v29 = vadd.f32 %v542_v25, %v541_v28 }
  0xb6   : > { %777 = vmatpush.msk.msra.mxu3 %vm393_vm11, %v992_v19 }
  0xb7   : > { %v544_v30 = vrot.slane %v543_v29, 4 }
  0xb9   : > { %v545_v31 = vadd.f32 %v544_v30, %v543_v29 }
  0xbb   : > { %v546_v32 = vrot.slane %v545_v31, 2 }
  0xbd   : > { %v547_v33 = vadd.f32 %v546_v32, %v545_v31 }
  0xbf   : > { %v548_v34 = vrot.slane %v547_v33, 1 }
  0xc1   : > { %v549_v35 = vadd.f32 %v548_v34, %v547_v33 }
  0xc3   : > { %v550_v37 = vadd.f32 %v549_v35, %v540_v36 }
  0xc5   : > { %552 = vst.msk [vmem:[%s1120_s11] sm:$0x1] %vm551_vm12, %v550_v37 }
 0x145   : > { %v431_v38 = vpop.trf.xlu2 }
 0x146   : > { %757 = vmatmul.msk.f32.vlgmr.msra.gmra.mxu0 %vm447_vm13, %v431_v38  ;;  %763 = vmatmul.msk.f32.vlgmr.msra.gmra.mxu1 %vm447_vm13, %v431_v38 }
 0x14d   : > { %v432_v39 = vpop.trf.xlu2 }
 0x14e   : > { %758 = vmatmul.msk.f32.gmra.mxu0 %vm447_vm13, %v432_v39  ;;  %764 = vmatmul.msk.f32.gmra.mxu1 %vm447_vm13, %v432_v39 }
 0x155   : > { %v433_v40 = vpop.trf.xlu2 }
 0x156   : > { %759 = vmatmul.msk.f32.vlgmr.msra.gmra.mxu2 %vm447_vm13, %v433_v40  ;;  %765 = vmatmul.msk.f32.vlgmr.msra.gmra.mxu3 %vm447_vm13, %v433_v40 }
 0x15d   : > { %v434_v41 = vpop.trf.xlu2 }
 0x15e   : > { %760 = vmatmul.msk.f32.gmra.mxu2 %vm447_vm13, %v434_v41  ;;  %766 = vmatmul.msk.f32.gmra.mxu3 %vm447_vm13, %v434_v41 }
 0x15f   : > { %889 = shalt.err (!%p886_p10)
}
 0x160   : > { %779 = dma.vmem_to_hbm [thread:$0]  (%p1070_p3), %s595_s26, 16, %s597_s8, %s564_s9   ;;  %v411_v42 = vld [vmem:[%s1117_s10] sm:$0xff]  ;;  %vm493_vm14 = vcmask 261120   ;;  %v412_v48 = vld [vmem:[%s1117_s10 + $0x8] sm:$0xff]  ;;  %v413_v54 = vld [vmem:[%s1117_s10 + $0x10] sm:$0xff] }
 0x161   : > { %v498_v43 = vld [vmem:[%s1105_s24] sm:$0xff]  ;;  %v499_v49 = vld [vmem:[%s1105_s24 + $0x8] sm:$0xff]  ;;  %v500_v55 = vld [vmem:[%s1105_s24 + $0x10] sm:$0xff]  ;;  %s773_s11 = sshll.u32 %s976_s19, 5  ;;  %s575_s25 = sshll.u32 %s1117_s10, 4  ;;  %s576_s25 = int_to_ptr.vmem [resolvable:$true] %s575_s25 }
 0x162   : > { %s574_s21 = scalar_lea.hbm %s1230_s2, %s773_s11  ;;  %v414_v60 = vld [vmem:[%s1117_s10 + $0x18] sm:$0xff]  ;;  %s554_s19 = scalar_lea.sflag [#allocation3], %s1091_s6 }
 0x163   : > { %v501_v61 = vld [vmem:[%s1105_s24 + $0x18] sm:$0xff]  ;;  %s577_s26 = sshll.u32 %s574_s21, 4  ;;  %s910_s14 = scalar_lea.hbm %s1230_s2, 64  ;;  %s578_s26 = int_to_ptr.hbm [resolvable:$true] %s577_s26 }
 0x164   : > { %s904_s8 = sshra.s32 %s578_s26, 4  ;;  %s905_s8 = int_to_ptr.hbm [resolvable:$true] %s904_s8 }
 0x165   : > { %s906_s9 = scalar_lea.hbm %s905_s8, 32  ;;  %p911_p0 = scmp.lt.s32.totalorder %s905_s8, %s1230_s2 }
 0x166   : > { %p907_p11 = scmp.ne.s32.totalorder %s905_s8, %s906_s9  ;;  %p912_p1 = scmp.lt.s32.totalorder %s910_s14, %s906_s9 }
 0x168   : > { %p908_p12 = pnand %p907_p11, %p1070_p3  ;;  %p913_p2 = por %p912_p1, %p911_p0 }
 0x16a   : > { %p909_p13 = pneg %p908_p12 }
 0x16c   : > { %p914_p4 = pnand %p913_p2, %p909_p13 }
 0x1c3   : > { %v477_v44 = vpop.f32.mrf.mxu0  ;;  %v519_v45 = vpop.f32.mrf.mxu1 }
 0x1c4   : > { %v489_v46 = vadd.f32 %v477_v44, %v411_v42  ;;  %v531_v47 = vadd.f32 %v519_v45, %v498_v43 }
 0x1c6   : > { %494 = vst.msk [vmem:[%s1117_s10] sm:$0xff] %vm493_vm14, %v489_v46 }
 0x1c7   : > { %536 = vst.msk [vmem:[%s1105_s24] sm:$0xff] %vm535_vm9, %v531_v47 }
 0x1cb   : > { %v480_v50 = vpop.f32.mrf.mxu0  ;;  %v522_v51 = vpop.f32.mrf.mxu1 }
 0x1cc   : > { %v490_v52 = vadd.f32 %v480_v50, %v412_v48  ;;  %v532_v53 = vadd.f32 %v522_v51, %v499_v49 }
 0x1ce   : > { %495 = vst.msk [vmem:[%s1117_s10 + $0x8] sm:$0xff] %vm493_vm14, %v490_v52 }
 0x1cf   : > { %537 = vst.msk [vmem:[%s1105_s24 + $0x8] sm:$0xff] %vm535_vm9, %v532_v53 }
 0x1d9   : > { %v483_v56 = vpop.f32.mrf.mxu2  ;;  %v525_v57 = vpop.f32.mrf.mxu3 }
 0x1da   : > { %v491_v58 = vadd.f32 %v483_v56, %v413_v54  ;;  %v533_v59 = vadd.f32 %v525_v57, %v500_v55 }
 0x1dc   : > { %496 = vst.msk [vmem:[%s1117_s10 + $0x10] sm:$0xff] %vm493_vm14, %v491_v58 }
 0x1dd   : > { %538 = vst.msk [vmem:[%s1105_s24 + $0x10] sm:$0xff] %vm535_vm9, %v533_v59 }
 0x1e1   : > { %v486_v62 = vpop.f32.mrf.mxu2  ;;  %v528_v63 = vpop.f32.mrf.mxu3 }
 0x1e2   : > { %v492_v0 = vadd.f32 %v486_v62, %v414_v60  ;;  %v534_v1 = vadd.f32 %v528_v63, %v501_v61 }
 0x1e4   : > { %497 = vst.msk [vmem:[%s1117_s10 + $0x18] sm:$0xff] %vm493_vm14, %v492_v0 }
 0x1e5   : > { %539 = vst.msk [vmem:[%s1105_s24 + $0x18] sm:$0xff] %vm535_vm9, %v534_v1 }
 0x1e6   : > { %917 = shalt.err (!%p914_p4)
}
 0x1e7   : > { %s994_s6 = smov 128   ;;  %s995_s24 = smov 8  }
 0x1e8   : > { %778 = dma.vmem_to_hbm [thread:$0]  (%p1070_p3), %s576_s25, 512, %s578_s26, %s554_s19, %s994_s6, %s994_s6, %s995_s24  }
 0x1e9 PF: > { %p789_p5 = scmp.ge.s32.totalorder %s988_s22, 2  ;;  %s608_s10 = sand.u32 1, %s960_s15  }
 0x1ea   : > { %s609_s30 = scalar_lea.sflag [#allocation3], %s608_s10 }
 0x1eb   : > { %p783_p6 = pnand %p789_p5, %p1080_p9 }
 0x1ed   : > { %p784_p7 = pneg %p783_p6 }
 0x1ef   : > { %951 = dma.done.wait (%p784_p7), %s609_s30, 512  }
 0x1f0   : > { %953 = vsyncadd (%p784_p7), %s609_s30, 4294966784  ;;  %s627_s7 = scalar_lea.sflag [#allocation5], %s608_s10 }
 0x1f1   : > { %955 = dma.done.wait (%p784_p7), %s627_s7, 16  }
 0x1f2   : > { %957 = vsyncadd (%p784_p7), %s627_s7, 4294967280  ;;  %s21_s22 = sadd.s32 1, %s988_s22   ;;  %s1242_s18 = sld [smem:[#allocation8_spill]] }
 0x1f3   : > { %p18_p8 = scmp.ge.s32.totalorder %s21_s22, 6   ;;  %s1243_s19 = sld [smem:[#allocation9_spill]] }
 0x1f4   : > { %s1244_s20 = sld [smem:[#allocation10_spill]]  ;;  %s1246_s15 = smov %s964_s16 }
 0x1f5   : > { %s1245_s21 = sld [smem:[#allocation11_spill]]  ;;  %s1247_s16 = smov %s968_s17 }
 0x1f6   : > { %s1248_s17 = smov %s1088_s5  ;;  %20 = sbr.rel (!%p18_p8) target bundleno = 7 (0x7), region = 99 }
 0x1fb   :  { %632 = vsyncpa [#allocation3], 1 }
 0x1fc   :  { %634 = vsyncpa [#allocation3 + $0x1], 1 }
 0x1fd   :  { %635 = vsyncpa [#allocation5], 1 }
 0x1fe   :  { %637 = vsyncpa [#allocation5 + $0x1], 1 }

</bundles_post_ra>
